<compile_context>
chip_gen: v5e
topology: v5e:2x2
jax: 0.10.0
libtpu: 0.0.40
codegen_flags: <defaults>
</compile_context>

<pallas_src>
import jax
import jax.numpy as jnp
from jax.experimental import pallas as pl
from jax.experimental.pallas import tpu as pltpu

_LANE = 128
_SUB = 8
_SLAB = _LANE * _SUB              # 1024 elems: one fully-dense f32 vreg slab
_MAX_TILE_ELEMS = 256 * 1024      # per-step L tile (~2 MiB f32 input at C=2)


def _model_kernel(w_ref, b_ref, x_ref, o_ref):
    # w_ref: (N, C) f32 in SMEM      b_ref: (N,) f32 in SMEM
    # x_ref: (1, C, S, 128) in VMEM  (L packed as sublane-dense (S,128) slabs)
    # o_ref: (1, S, 128)    in VMEM  (lane-dense, full-sublane output)
    N, C = w_ref.shape

    # One dense (S, 128) load per input channel; upcast to f32 for compute.
    xs = [x_ref[0, c, :, :].astype(jnp.float32) for c in range(C)]

    # Linear fused with permute(0, 2, 1): contract over C with scalar weights
    # on the VPU; L stays on the lane/sublane axes (no transpose, no MXU).
    # Identity + eval-mode Dropout are no-ops.
    chans = []
    for n in range(N):
        acc = xs[0] * w_ref[n, 0]
        for c in range(1, C):
            acc = acc + xs[c] * w_ref[n, c]
        chans.append(acc + b_ref[n])                      # (S, 128)

    # MaxPool1d(kernel=2, stride=2, floor mode) over the output-channel axis
    # (drops the last channel if N is odd, like PyTorch), then
    # AdaptiveAvgPool1d((1,)) == mean over the pooled windows.
    n_windows = N // 2
    win_sum = None
    for j in range(n_windows):
        m = jnp.maximum(chans[2 * j], chans[2 * j + 1])
        win_sum = m if win_sum is None else win_sum + m
    out = win_sum if n_windows == 1 else win_sum * (1.0 / n_windows)

    o_ref[0, :, :] = out.astype(o_ref.dtype)


def _choose_tile(L):
    """Pick an L tile (in elements): a multiple of 8*128, capped so the
    double-buffered VMEM footprint stays small on every TPU generation, and
    sized so the grid covers L with minimal tail padding."""
    slabs = pl.cdiv(L, _SLAB)
    n_steps = pl.cdiv(slabs * _SLAB, _MAX_TILE_ELEMS)
    tile_slabs = pl.cdiv(slabs, n_steps)
    return tile_slabs * _SLAB, n_steps


def model_forward(x, weight, bias):
    """x: (B, C, L); weight: (N, C); bias: (N,)  ->  (B, L, 1) in x.dtype."""
    B, C, L = x.shape
    N, C_w = weight.shape
    assert C_w == C
    assert N >= 2, "MaxPool1d(kernel_size=2) needs at least one full window"

    tile, n_steps = _choose_tile(L)
    L_pad = tile * n_steps
    S = tile // _LANE                        # sublane rows per step (mult. of 8)

    if L_pad != L:
        x = jnp.pad(x, ((0, 0), (0, 0), (0, L_pad - L)))
    # Free row-major reshape: pack L into sublane-dense (rows, 128) slabs.
    x4 = x.reshape(B, C, L_pad // _LANE, _LANE)

    out = pl.pallas_call(
        _model_kernel,
        grid=(B, n_steps),
        out_shape=jax.ShapeDtypeStruct((B, L_pad // _LANE, _LANE), x.dtype),
        in_specs=[
            pl.BlockSpec(memory_space=pltpu.MemorySpace.SMEM),   # weight (N, C)
            pl.BlockSpec(memory_space=pltpu.MemorySpace.SMEM),   # bias (N,)
            pl.BlockSpec((1, C, S, _LANE), lambda b, l: (b, 0, l, 0)),
        ],
        out_specs=pl.BlockSpec((1, S, _LANE), lambda b, l: (b, l, 0)),
        compiler_params=pltpu.CompilerParams(
            dimension_semantics=("parallel", "parallel")),
    )(weight.astype(jnp.float32), bias.astype(jnp.float32), x4)

    # (B, L_pad/128, 128) -> (B, L_pad) -> drop tail padding -> (B, L, 1)
    return out.reshape(B, L_pad)[:, :L].reshape(B, L, 1)


def _reference(x, weight, bias):
    B, C, L = x.shape
    N = weight.shape[0]
    xf = x.astype(jnp.float32)
    v1 = jnp.transpose(xf, (0, 2, 1))                         # (B, L, C)
    v2 = v1 @ weight.astype(jnp.float32).T + bias.astype(jnp.float32)
    v6 = jnp.max(v2[..., : (N // 2) * 2].reshape(B, L, N // 2, 2), axis=-1)
    return jnp.mean(v6, axis=-1, keepdims=True).astype(x.dtype)


if __name__ == "__main__":
    key = jax.random.PRNGKey(0)
    k_x, k_w, k_b, k_x2 = jax.random.split(key, 4)

    # Shapes implied by the module: x1 ~ (1, 2, 2), Linear(2, 2)
    B, C, L = 1, 2, 2
    N = 2

    x = jax.random.normal(k_x, (B, C, L), dtype=jnp.float32)

    # Deterministic Linear(2, 2) init (uniform in [-1/sqrt(C), 1/sqrt(C)],
    # like PyTorch's default).
    bound = 1.0 / (C ** 0.5)
    weight = jax.random.uniform(k_w, (N, C), jnp.float32, -bound, bound)
    bias = jax.random.uniform(k_b, (N,), jnp.float32, -bound, bound)

    out = jax.block_until_ready(model_forward(x, weight, bias))
    ref = _reference(x, weight, bias)
    assert out.shape == (B, L, 1)
    assert jnp.allclose(out, ref, atol=1e-5, rtol=1e-5)

    # Larger, non-slab-aligned shape to exercise the padded multi-step grid
    # and the sublane-dense (S, 128) store path.
    x2 = jax.random.normal(k_x2, (2, C, 3000), dtype=jnp.float32)
    out2 = jax.block_until_ready(model_forward(x2, weight, bias))
    ref2 = _reference(x2, weight, bias)
    assert out2.shape == (2, 3000, 1)
    assert jnp.allclose(out2, ref2, atol=1e-5, rtol=1e-5)

    print("KERNEL_OK")
</pallas_src>

<mosaic_0001>
module attributes {stable_mosaic.version = 11 : i64} {
  func.func @_model_kernel(%arg0: i32, %arg1: i32, %arg2: memref<2x2xf32, #tpu.memory_space<smem>>, %arg3: memref<2xf32, #tpu.memory_space<smem>>, %arg4: memref<1x2x8x128xf32, #tpu.memory_space<vmem>>, %arg5: memref<1x8x128xf32, #tpu.memory_space<vmem>>) attributes {dimension_semantics = [#tpu.dimension_semantics<parallel>, #tpu.dimension_semantics<parallel>], iteration_bounds = array<i64: 1, 1>, scalar_prefetch = 0 : i64, scratch_operands = 0 : i64, tpu.core_type = #tpu.core_type<tc>, window_params = [{transform_indices = @transform_0, window_bounds = array<i64: 2, 2>}, {transform_indices = @transform_1, window_bounds = array<i64: 2>}, {transform_indices = @transform_2, window_bounds = array<i64: 1, 2, 8, 128>}, {transform_indices = @transform_3, window_bounds = array<i64: 1, 8, 128>}]} {
    %c0 = arith.constant 0 : index
    %c0_0 = arith.constant 0 : index
    %c0_1 = arith.constant 0 : index
    %c0_2 = arith.constant 0 : index
    %0 = vector.load %arg4[%c0, %c0_0, %c0_1, %c0_2] : memref<1x2x8x128xf32, #tpu.memory_space<vmem>>, vector<1x1x8x128xf32>
    %1 = vector.shape_cast %0 : vector<1x1x8x128xf32> to vector<8x128xf32>
    %c0_3 = arith.constant 0 : index
    %c1 = arith.constant 1 : index
    %c0_4 = arith.constant 0 : index
    %c0_5 = arith.constant 0 : index
    %2 = vector.load %arg4[%c0_3, %c1, %c0_4, %c0_5] : memref<1x2x8x128xf32, #tpu.memory_space<vmem>>, vector<1x1x8x128xf32>
    %3 = vector.shape_cast %2 : vector<1x1x8x128xf32> to vector<8x128xf32>
    %c0_6 = arith.constant 0 : index
    %c0_7 = arith.constant 0 : index
    %4 = memref.load %arg2[%c0_6, %c0_7] : memref<2x2xf32, #tpu.memory_space<smem>>
    %5 = vector.broadcast %4 : f32 to vector<8x128xf32>
    %6 = arith.mulf %1, %5 : vector<8x128xf32>
    %c0_8 = arith.constant 0 : index
    %c1_9 = arith.constant 1 : index
    %7 = memref.load %arg2[%c0_8, %c1_9] : memref<2x2xf32, #tpu.memory_space<smem>>
    %8 = vector.broadcast %7 : f32 to vector<8x128xf32>
    %9 = arith.mulf %3, %8 : vector<8x128xf32>
    %10 = arith.addf %6, %9 : vector<8x128xf32>
    %c0_10 = arith.constant 0 : index
    %11 = memref.load %arg3[%c0_10] : memref<2xf32, #tpu.memory_space<smem>>
    %12 = vector.broadcast %11 : f32 to vector<8x128xf32>
    %13 = arith.addf %10, %12 : vector<8x128xf32>
    %c1_11 = arith.constant 1 : index
    %c0_12 = arith.constant 0 : index
    %14 = memref.load %arg2[%c1_11, %c0_12] : memref<2x2xf32, #tpu.memory_space<smem>>
    %15 = vector.broadcast %14 : f32 to vector<8x128xf32>
    %16 = arith.mulf %1, %15 : vector<8x128xf32>
    %c1_13 = arith.constant 1 : index
    %c1_14 = arith.constant 1 : index
    %17 = memref.load %arg2[%c1_13, %c1_14] : memref<2x2xf32, #tpu.memory_space<smem>>
    %18 = vector.broadcast %17 : f32 to vector<8x128xf32>
    %19 = arith.mulf %3, %18 : vector<8x128xf32>
    %20 = arith.addf %16, %19 : vector<8x128xf32>
    %c1_15 = arith.constant 1 : index
    %21 = memref.load %arg3[%c1_15] : memref<2xf32, #tpu.memory_space<smem>>
    %22 = vector.broadcast %21 : f32 to vector<8x128xf32>
    %23 = arith.addf %20, %22 : vector<8x128xf32>
    %24 = arith.maximumf %13, %23 : vector<8x128xf32>
    %c0_16 = arith.constant 0 : index
    %c0_17 = arith.constant 0 : index
    %c0_18 = arith.constant 0 : index
    %25 = vector.load %arg5[%c0_16, %c0_17, %c0_18] : memref<1x8x128xf32, #tpu.memory_space<vmem>>, vector<1x8x128xf32>
    %26 = vector.shape_cast %25 : vector<1x8x128xf32> to vector<8x128xf32>
    %27 = vector.shape_cast %24 : vector<8x128xf32> to vector<1x8x128xf32>
    tpu.vector_store %arg5[%c0_16, %c0_17, %c0_18], %27 {strides = array<i32>} : memref<1x8x128xf32, #tpu.memory_space<vmem>>, vector<1x8x128xf32>,
    return
  }
  func.func @transform_0(%arg0: i32, %arg1: i32) -> (i32, i32) {
    %c0_i32 = arith.constant 0 : i32
    %c0_i32_0 = arith.constant 0 : i32
    %c0_i32_1 = arith.constant 0 : i32
    return %c0_i32, %c0_i32_0 : i32, i32
  }
  func.func @transform_1(%arg0: i32, %arg1: i32) -> i32 {
    %c0_i32 = arith.constant 0 : i32
    %c0_i32_0 = arith.constant 0 : i32
    return %c0_i32 : i32
  }
  func.func @transform_2(%arg0: i32, %arg1: i32) -> (i32, i32, i32, i32) {
    %c0_i32 = arith.constant 0 : i32
    %c0_i32_0 = arith.constant 0 : i32
    %c0_i32_1 = arith.constant 0 : i32
    return %arg0, %c0_i32, %arg1, %c0_i32_0 : i32, i32, i32, i32
  }
  func.func @transform_3(%arg0: i32, %arg1: i32) -> (i32, i32, i32) {
    %c0_i32 = arith.constant 0 : i32
    %c0_i32_0 = arith.constant 0 : i32
    return %arg0, %arg1, %c0_i32 : i32, i32, i32
  }
}

</mosaic_0001>

<bundles_post_ra>
// kernel: tpu_custom_call.1
= control target key start
LH: loop header
LB: loop body
LE: loop exit
PB: predicated region body
PF: predicated region fallthrough
CT: control target
= control target key end

     0   :  { %8 = vsyncpa [#allocation5], 0  ;;  %s228_s0 = inlined_call_operand.hbm [shape: f32[2,2], index: 0, kind: input, shape index: {}]   ;;  %s229_s1 = inlined_call_operand.hbm [shape: f32[2], index: 1, kind: input, shape index: {}]   ;;  %s230_s2 = inlined_call_operand.hbm [shape: f32[1,2,8,128], index: 2, kind: input, shape index: {}]   ;;  %s231_s3 = inlined_call_operand.hbm [shape: f32[1,8,128], index: 3, kind: output, shape index: {}]  }
   0x1   :  { %9 = vsyncpa [#allocation7], 0 }
   0x2   :  { %10 = vsyncpa [#allocation3], 0 }
   0x3   :  { %11 = vsyncpa [#allocation4], 0  ;;  %s17_s14 = sshll.u32 %s228_s0, 4  ;;  %s26_s17 = sshll.u32 %s229_s1, 4  ;;  %s18_s14 = int_to_ptr.hbm [resolvable:$true] %s17_s14  ;;  %s27_s17 = int_to_ptr.hbm [resolvable:$true] %s26_s17 }
   0x4   :  { %s190_s18 = smov [#allocation2]   ;;  %s191_s19 = smov [#allocation6]  }
   0x5   :  { %20 = dma.hbm_to_smem %s18_s14, 32, %s190_s18, [#allocation5]  }
   0x6   :  { %29 = dma.hbm_to_smem %s27_s17, 16, %s191_s19, [#allocation7]  }
   0x7   :  { %s34_s22 = sshll.u32 %s230_s2, 4  ;;  %s192_s23 = smov [#allocation8]   ;;  %s35_s22 = int_to_ptr.hbm [resolvable:$true] %s34_s22 }
   0x8   :  { %s36_s24 = sshll.u32 %s192_s23, 4  ;;  %s193_s25 = smov 128   ;;  %s37_s24 = int_to_ptr.vmem [resolvable:$true] %s36_s24 }
   0x9   :  { %s194_s0 = smov 8  }
   0xa   :  { %42 = dma.hbm_to_vmem [thread:$0]  %s35_s22, 256, %s37_s24, [#allocation3], %s193_s25, %s193_s25, %s194_s0  }
   0xb   :  { %182 = dma.done.wait [#allocation5], 32  }
   0xc   :  { %183 = vsyncadd [#allocation5], 4294967264 }
   0xd   :  { %184 = dma.done.wait [#allocation7], 16  }
   0xe   :  { %185 = vsyncadd [#allocation7], 4294967280 }
   0xf   :  { %186 = dma.done.wait [#allocation3], 256  }
  0x10   :  { %187 = vsyncadd [#allocation3], 4294967040 }
  0x11   :  { %55 = sfence }
  0x12   :  { %s59_s1 = sld [smem:[#allocation2]]  ;;  %v56_v0 = vld [vmem:[#allocation8] sm:$0xff]  ;;  %v58_v1 = vld [vmem:[#allocation8 + $0x8] sm:$0xff]  ;;  %s195_s30 = smov [#allocation9]  }
  0x13   :  { %s100_s26 = sld [smem:[#allocation2 + $0x1]]  ;;  %s86_s4 = sshll.u32 %s195_s30, 4  ;;  %s87_s4 = int_to_ptr.vmem [resolvable:$true] %s86_s4 }
  0x14   :  { %s66_s27 = sld [smem:[#allocation6]]  ;;  %s88_s7 = sshll.u32 %s231_s3, 4  ;;  %s89_s7 = int_to_ptr.hbm [resolvable:$true] %s88_s7 }
  0x15   :  { %s101_s28 = sld [smem:[#allocation2 + $0x80]] }
  0x16   :  { %s102_s2 = sld [smem:[#allocation2 + $0x81]] }
  0x17   :  { %s103_s29 = sld [smem:[#allocation6 + $0x1]] }
  0x18   :  { %v60_v2 = vstv %s59_s1 }
  0x19   :  { %v61_v3 = vmul.f32 %v60_v2, %v56_v0  ;;  %v63_v4 = vstv %s100_s26 }
  0x1a   :  { %v64_v5 = vmul.f32 %v63_v4, %v58_v1  ;;  %v67_v8 = vstv %s66_s27 }
  0x1b   :  { %v70_v6 = vstv %s101_s28 }
  0x1c   :  { %v65_v7 = vadd.f32 %v64_v5, %v61_v3  ;;  %v71_v9 = vmul.f32 %v70_v6, %v56_v0  ;;  %v73_v10 = vstv %s102_s2 }
  0x1d   :  { %v74_v11 = vmul.f32 %v73_v10, %v58_v1  ;;  %v77_v12 = vstv %s103_s29 }
  0x1e   :  { %v68_v13 = vadd.f32 %v67_v8, %v65_v7 }
  0x1f   :  { %v75_v14 = vadd.f32 %v74_v11, %v71_v9 }
  0x21   :  { %v78_v15 = vadd.f32 %v77_v12, %v75_v14 }
  0x23   :  { %v79_v16 = vmax.f32 %v68_v13, %v78_v15 }
  0x25   :  { %80 = vst [vmem:[#allocation9] sm:$0xff] %v79_v16 }
  0x26   :  { %91 = dma.vmem_to_hbm [thread:$0]  %s87_s4, 128, %s89_s7, [#allocation4]  }
  0x27   :  { %188 = dma.done.wait [#allocation4], 128  }
  0x28   :  { %189 = vsyncadd [#allocation4], 4294967168 }
  0x29   :  { %96 = vsyncpa [#allocation3], 1 }
  0x2a   :  { %97 = vsyncpa [#allocation4], 1 }
  0x2b   :  { %98 = vsyncpa [#allocation5], 1 }
  0x2c   :  { %99 = vsyncpa [#allocation7], 1 }

</bundles_post_ra>
